<compile_context>
chip_gen: v6e
topology: v6e:2x2x1
jax: 0.10.0
libtpu: 0.0.40
codegen_flags: <defaults>
</compile_context>

<pallas_src>
import jax
import jax.numpy as jnp
from jax.experimental import pallas as pl
from jax.experimental.pallas import tpu as pltpu


# ----------------------------------------------------------------------------
# Kernels
# ----------------------------------------------------------------------------

def _alias_noop_kernel(x_ref, o_ref):
    # Output aliases input and both stay in pl.ANY (HBM): nothing to move.
    # pltpu.touch pins ordering so the aliased output "materializes" after the
    # kernel without any vld/vst or DMA traffic.
    del x_ref
    pltpu.touch(o_ref)


def _identity_copy_kernel(x_ref, o_ref):
    # Entire forward pass of DistributionCap: elementwise identity.
    o_ref[...] = x_ref[...]


# ----------------------------------------------------------------------------
# Helpers
# ----------------------------------------------------------------------------

def _vmem_limit_bytes(cap: int = 64 << 20) -> int:
    """Generation-aware scoped-VMEM budget (~half of physical VMEM, capped)."""
    try:
        physical = int(pltpu.get_tpu_info().vmem_capacity_bytes)
    except Exception:
        physical = 128 << 20  # conservative v5e/v6e fallback
    return max(16 << 20, min(physical // 2, cap))


def _lane_dense_2d(total_elems: int):
    """Pick a (rows, lane_w) factorization with lane_w a multiple of 128."""
    if total_elems <= 0 or total_elems % 128 != 0:
        return None
    for lane_w in (1024, 512, 256, 128):
        if total_elems % lane_w == 0:
            return total_elems // lane_w, lane_w
    return None


def _row_alignment(itemsize: int) -> int:
    # Sub-32-bit dtypes pack along sublanes: 8 rows (f32), 16 (bf16), 32 (i8).
    return max(8, 32 // max(1, itemsize))


def _tiled_identity_copy(x2d: jax.Array, *, target_tile_bytes: int) -> jax.Array:
    rows, lane_w = x2d.shape
    dtype = x2d.dtype
    itemsize = jnp.dtype(dtype).itemsize
    row_align = _row_alignment(itemsize)

    vmem_limit = _vmem_limit_bytes()
    # 2x input + 2x output double-buffers + ~20% headroom must fit the budget.
    tile_budget = min(target_tile_bytes, vmem_limit // 5)

    bytes_per_row = lane_w * itemsize
    tile_rows = (tile_budget // bytes_per_row) // row_align * row_align
    tile_rows = max(row_align, tile_rows)
    if tile_rows >= rows:
        tile_rows = rows  # whole-array block (always legal)

    grid = (pl.cdiv(rows, tile_rows),)
    total_bytes = rows * lane_w * itemsize

    return pl.pallas_call(
        _identity_copy_kernel,
        out_shape=jax.ShapeDtypeStruct((rows, lane_w), dtype),
        grid=grid,
        in_specs=[pl.BlockSpec((tile_rows, lane_w), lambda i: (i, 0))],
        out_specs=pl.BlockSpec((tile_rows, lane_w), lambda i: (i, 0)),
        input_output_aliases={0: 0},
        cost_estimate=pl.CostEstimate(
            flops=0, transcendentals=0, bytes_accessed=2 * total_bytes),
        compiler_params=pltpu.CompilerParams(
            # TODO(synk): on v7x, switch to pltpu.CORE_PARALLEL if plain
            # "parallel" does not shard the copy across both TensorCores.
            dimension_semantics=("parallel",),
            vmem_limit_bytes=vmem_limit,
        ),
    )(x2d)


def _alias_identity(x: jax.Array) -> jax.Array:
    """Zero-HBM-traffic identity: aliased output, ANY memory space, no-op body."""
    return pl.pallas_call(
        _alias_noop_kernel,
        out_shape=jax.ShapeDtypeStruct(x.shape, x.dtype),
        in_specs=[pl.BlockSpec(memory_space=pl.ANY)],
        out_specs=pl.BlockSpec(memory_space=pl.ANY),
        input_output_aliases={0: 0},
        compiler_params=pltpu.CompilerParams(has_side_effects=True),
    )(x)


# ----------------------------------------------------------------------------
# Public API
# ----------------------------------------------------------------------------

def distribution_cap_forward(x: jax.Array, **kwargs) -> jax.Array:
    """DistributionCap.forward(x) -> x. Pure identity; no kernel (hot path)."""
    del kwargs
    return x


def distribution_cap_forward_pallas(
    x: jax.Array,
    *,
    force_copy: bool = False,
    target_tile_bytes: int = 4 << 20,
) -> jax.Array:
    """Identity forward through an explicit Pallas kernel boundary.

    Default: zero-HBM-traffic aliased no-op kernel. For the alias to be truly
    in-place, callers should donate x (jax.jit(..., donate_argnums=...));
    otherwise XLA inserts one defensive copy.

    force_copy=True (or a lowering failure of the no-op path) uses a tiled,
    lane-dense VMEM copy sized near HBM roofline with a generation-aware
    VMEM budget.
    """
    orig_shape = x.shape
    dtype = x.dtype
    total = int(x.size)

    if total == 0:
        return x

    if not force_copy:
        try:
            out = _alias_identity(x)
            jax.block_until_ready(out)
            return out
        except Exception:
            # Fall back to the explicit tiled copy if the zero-traffic no-op
            # kernel cannot be lowered on this backend/version.
            pass

    shape2d = _lane_dense_2d(total)
    if shape2d is not None:
        rows, lane_w = shape2d
        out2d = _tiled_identity_copy(
            x.reshape(rows, lane_w), target_tile_bytes=target_tile_bytes)
        return out2d.reshape(orig_shape)

    # Element count not a multiple of 128: pad the flat array to a lane- and
    # sublane-dense multiple, run the same tiled copy, slice back. Keeps the
    # copy tiled (no whole-array VMEM block) for arbitrarily large inputs.
    itemsize = jnp.dtype(dtype).itemsize
    pad_to = _row_alignment(itemsize) * 128
    padded_total = ((total + pad_to - 1) // pad_to) * pad_to
    flat = jnp.pad(jnp.ravel(x), (0, padded_total - total))
    rows, lane_w = _lane_dense_2d(padded_total)
    out_flat = _tiled_identity_copy(
        flat.reshape(rows, lane_w), target_tile_bytes=target_tile_bytes
    ).reshape(-1)
    return out_flat[:total].reshape(orig_shape)


# TODO(synk): get_return / get_argmax / rsample operate on torch.distributions
# objects and are not part of forward; no Pallas equivalent is emitted.


if __name__ == "__main__":
    key = jax.random.PRNGKey(0)
    k0, k1, k2, k3 = jax.random.split(key, 4)

    # Small NCHW-style input consistent with a network output feeding this cap.
    x = jax.random.normal(k0, (2, 4, 16, 16), dtype=jnp.float32)

    # Hot path: pure identity, no kernel launch.
    y_fast = distribution_cap_forward(x)
    assert y_fast.shape == x.shape and y_fast.dtype == x.dtype
    assert bool(jnp.array_equal(y_fast, x)), "identity mismatch (fast path)"

    # Zero-HBM-traffic aliased Pallas kernel (explicit kernel boundary).
    y_alias = distribution_cap_forward_pallas(x)
    jax.block_until_ready(y_alias)
    assert y_alias.shape == x.shape and y_alias.dtype == x.dtype
    assert bool(jnp.array_equal(y_alias, x)), "identity mismatch (alias path)"

    # Explicit tiled-copy path; small tiles to exercise grid > 1.
    x_big = jax.random.normal(k1, (8, 16, 32, 128), dtype=jnp.float32)  # 2 MiB
    y_copy = distribution_cap_forward_pallas(
        x_big, force_copy=True, target_tile_bytes=1 << 19)
    jax.block_until_ready(y_copy)
    assert bool(jnp.array_equal(y_copy, x_big)), "identity mismatch (tiled copy)"

    # bf16 exercises the dtype-aware (16-row) sublane alignment.
    x_bf16 = jax.random.normal(k2, (4, 16, 16, 16), dtype=jnp.bfloat16)
    y_bf16 = distribution_cap_forward_pallas(x_bf16, force_copy=True)
    jax.block_until_ready(y_bf16)
    assert bool(jnp.array_equal(y_bf16, x_bf16)), "identity mismatch (bf16 copy)"

    # Element count not a multiple of 128 exercises the padded fallback.
    x_odd = jax.random.normal(k3, (2, 3, 5, 7), dtype=jnp.float32)
    y_odd = distribution_cap_forward_pallas(x_odd, force_copy=True)
    jax.block_until_ready(y_odd)
    assert bool(jnp.array_equal(y_odd, x_odd)), "identity mismatch (padded copy)"

    print("KERNEL_OK")
</pallas_src>

<mosaic_0001>
module attributes {stable_mosaic.version = 11 : i64} {
  func.func @_alias_noop_kernel(%arg0: memref<2x4x16x16xf32, #tpu.memory_space<any>>, %arg1: memref<2x4x16x16xf32, #tpu.memory_space<any>>) attributes {dimension_semantics = [], scalar_prefetch = 0 : i64, scratch_operands = 0 : i64, tpu.core_type = #tpu.core_type<tc>} {
    return
  }
}

module attributes {stable_mosaic.version = 11 : i64} {
  func.func @_identity_copy_kernel(%arg0: i32, %arg1: memref<2x1024xf32, #tpu.memory_space<vmem>>, %arg2: memref<2x1024xf32, #tpu.memory_space<vmem>>) attributes {dimension_semantics = [#tpu.dimension_semantics<parallel>], iteration_bounds = array<i64: 1>, scalar_prefetch = 0 : i64, scratch_operands = 0 : i64, tpu.core_type = #tpu.core_type<tc>, window_params = [{transform_indices = @transform_0, window_bounds = array<i64: 2, 1024>}, {transform_indices = @transform_1, window_bounds = array<i64: 2, 1024>}]} {
    %c0 = arith.constant 0 : index
    %c0_0 = arith.constant 0 : index
    %0 = vector.load %arg1[%c0, %c0_0] : memref<2x1024xf32, #tpu.memory_space<vmem>>, vector<2x1024xf32>
    %c0_1 = arith.constant 0 : index
    %c0_2 = arith.constant 0 : index
    %1 = vector.load %arg2[%c0_1, %c0_2] : memref<2x1024xf32, #tpu.memory_space<vmem>>, vector<2x1024xf32>
    tpu.vector_store %arg2[%c0_1, %c0_2], %0 {strides = array<i32>} : memref<2x1024xf32, #tpu.memory_space<vmem>>, vector<2x1024xf32>,
    return
  }
  func.func @transform_0(%arg0: i32) -> (i32, i32) {
    %c0_i32 = arith.constant 0 : i32
    %c0_i32_0 = arith.constant 0 : i32
    return %arg0, %c0_i32 : i32, i32
  }
  func.func @transform_1(%arg0: i32) -> (i32, i32) {
    %c0_i32 = arith.constant 0 : i32
    %c0_i32_0 = arith.constant 0 : i32
    return %arg0, %c0_i32 : i32, i32
  }
}

</mosaic_0001>

<bundles_post_ra>
// kernel: tpu_custom_call.1
= control target key start
LH: loop header
LB: loop body
LE: loop exit
PB: predicated region body
PF: predicated region fallthrough
CT: control target
= control target key end

     0   :  { %s16_s0 = inlined_call_operand.hbm [shape: f32[2,4,16,16], index: 0, kind: input, shape index: {}, may-alias: {0,1}]   ;;  %s17_s1 = inlined_call_operand.hbm [shape: f32[2,4,16,16], index: 1, kind: output, shape index: {}, may-alias: {0,1}]  }

// kernel: tpu_custom_call.1
= control target key start
LH: loop header
LB: loop body
LE: loop exit
PB: predicated region body
PF: predicated region fallthrough
CT: control target
= control target key end

     0   :  { %6 = vsyncpa [#allocation3], 0  ;;  %s104_s0 = inlined_call_operand.hbm [shape: f32[2,1024], index: 0, kind: input, shape index: {}, may-alias: {0,1}]   ;;  %s105_s1 = inlined_call_operand.hbm [shape: f32[2,1024], index: 1, kind: output, shape index: {}, may-alias: {0,1}]  }
   0x1   :  { %7 = vsyncpa [#allocation4], 0  ;;  %s86_s6 = smov [#allocation2]  }
   0x2   :  { %s14_s7 = sshll.u32 %s86_s6, 4  ;;  %s15_s7 = int_to_ptr.vmem [resolvable:$true] %s14_s7 }
   0x3   :  { %s50_s8 = scalar_lea.vmem %s15_s7, 256  ;;  %p55_p1 = scmp.lt.s32.totalorder %s15_s7, %s15_s7 }
   0x4   :  { %p51_p0 = scmp.ne.s32.totalorder %s15_s7, %s50_s8  ;;  %p56_p2 = scmp.lt.s32.totalorder %s50_s8, %s50_s8 }
   0x6   :  { %p57_p3 = por %p56_p2, %p55_p1 }
   0x8   :  { %p58_p4 = pnand %p57_p3, %p51_p0 }
   0xa   :  { %61 = shalt.err (!%p58_p4)
}
   0xb   :  { %17 = dma.hbm_to_vmem [thread:$0]  %s104_s0, 256, %s15_s7, [#allocation3]  }
   0xc   :  { %82 = dma.done.wait [#allocation3], 256  }
   0xd   :  { %83 = vsyncadd [#allocation3], 4294967040  ;;  %s87_s11 = smov [#allocation5]   ;;  %v21_v0 = vld [vmem:[#allocation2] sm:$0xff]  ;;  %v22_v1 = vld [vmem:[#allocation2 + $0x8] sm:$0xff] }
   0xe   :  { %s31_s12 = sshll.u32 %s87_s11, 4  ;;  %23 = vst [vmem:[#allocation5] sm:$0xff] %v21_v0  ;;  %24 = vst [vmem:[#allocation5 + $0x8] sm:$0xff] %v22_v1  ;;  %s32_s12 = int_to_ptr.vmem [resolvable:$true] %s31_s12 }
   0xf   :  { %s62_s13 = scalar_lea.vmem %s32_s12, 256  ;;  %p67_p6 = scmp.lt.s32.totalorder %s32_s12, %s32_s12 }
  0x10   :  { %p63_p5 = scmp.ne.s32.totalorder %s32_s12, %s62_s13  ;;  %p68_p7 = scmp.lt.s32.totalorder %s62_s13, %s62_s13 }
  0x12   :  { %p69_p8 = por %p68_p7, %p67_p6 }
  0x14   :  { %p70_p9 = pnand %p69_p8, %p63_p5 }
  0x16   :  { %73 = shalt.err (!%p70_p9)
}
  0x17   :  { %34 = dma.vmem_to_hbm [thread:$0]  %s32_s12, 256, %s105_s1, [#allocation4]  }
  0x18   :  { %84 = dma.done.wait [#allocation4], 256  }
  0x19   :  { %85 = vsyncadd [#allocation4], 4294967040 }
  0x1a   :  { %38 = vsyncpa [#allocation3], 1 }
  0x1b   :  { %39 = vsyncpa [#allocation4], 1 }

</bundles_post_ra>
